<compile_context>
chip_gen: v7x
topology: tpu7x:2x2x1
jax: 0.10.0
libtpu: 0.0.40
codegen_flags: <defaults>
</compile_context>

<pallas_src>
import functools

import jax
import jax.numpy as jnp
from jax.experimental import pallas as pl
from jax.experimental.pallas import tpu as pltpu


def _mean_net_kernel(x_ref, w_ref, b_ref, mean_ref, *, tanh_mean: bool):
    # mean tile = x_tile @ W_tile + bias_row (MXU matmul, f32 accumulate;
    # bias add / tanh stay f32 on the VPU/EUP).
    acc = jnp.dot(x_ref[...], w_ref[...], preferred_element_type=jnp.float32)
    acc = acc + b_ref[...]
    if tanh_mean:
        acc = jnp.tanh(acc)
    mean_ref[...] = acc.astype(mean_ref.dtype)


def _round_up(x, m):
    return ((x + m - 1) // m) * m


def _vmem_capacity_bytes():
    try:
        return int(pltpu.get_tpu_info().vmem_capacity_bytes)
    except Exception:
        return 64 << 20  # conservative: v7x physical per-TC VMEM


def gaussian_shared_scale_forward(x, weight, bias, log_std,
                                  *, ac_dim, ac_chunk,
                                  min_std=1e-4, tanh_mean=False,
                                  zero_std=False, mxu_dtype=None,
                                  out_dtype=jnp.float32,
                                  block_b=1024, block_p=512,
                                  full_std=False, use_pallas=True):
    """Returns (mean, std) parameterizing the Normal distribution.

    x:       (B, in_dim)  (f32 or bf16 -- pass bf16 for half the x HBM stream)
    weight:  (in_dim, P)  (P = ac_chunk * ac_dim; transposed vs torch (out,in))
    bias:    (P,)
    log_std: (ac_dim,)

    mean: (B, P) out_dtype
    std:  (1, P) f32 (broadcasts against mean), or (B, P) if full_std=True
          for exact torch batch-shape parity.
    """
    B, K = x.shape
    P = ac_chunk * ac_dim
    assert weight.shape == (K, P)
    assert bias.shape == (P,)
    assert log_std.shape == (ac_dim,)

    # ---- std: tiny (P-element) computation, done entirely in the wrapper ----
    if zero_std:
        std = jnp.full((1, P), jnp.float32(min_std), dtype=jnp.float32)
    else:
        # torch: scale = log_std[None].repeat((B, ac_chunk)); std = exp(scale)+min_std
        std = (jnp.exp(jnp.tile(log_std.astype(jnp.float32), (ac_chunk,)))
               + jnp.float32(min_std)).reshape(1, P)
    if full_std:
        std = jnp.broadcast_to(std, (B, P))

    # ---- operand dtypes: only the small, resident W is recast ----
    w_in = weight if mxu_dtype is None else weight.astype(mxu_dtype)
    x_in = x
    bias_row = bias.astype(jnp.float32)

    if not use_pallas:
        # Escape hatch for tiny heads where pallas_call fixed overhead dominates.
        mean = jnp.dot(x_in.astype(jnp.float32), w_in.astype(jnp.float32)) + bias_row[None, :]
        if tanh_mean:
            mean = jnp.tanh(mean)
        return mean.astype(out_dtype), std

    # ---- lane-dense P: pad to a multiple of 128, slice off afterwards ----
    P_pad = max(128, _round_up(P, 128))
    if P_pad != P:
        w_in = jnp.pad(w_in, ((0, 0), (0, P_pad - P)))
        bias_row = jnp.pad(bias_row, ((0, P_pad - P),))
    bias_row = bias_row.reshape(1, P_pad)

    x_bytes = jnp.dtype(x_in.dtype).itemsize
    w_bytes = jnp.dtype(w_in.dtype).itemsize
    o_bytes = jnp.dtype(out_dtype).itemsize
    # Sublane packing granularity for the B (row) axis: 8 for 32-bit,
    # 16 for 16-bit, 32 for 8-bit operands/outputs.
    sub = 32 // min(x_bytes, o_bytes)

    if block_p < 128 or block_p % 128 != 0:
        raise ValueError(f"block_p must be a multiple of 128, got {block_p}")
    if block_b < sub or block_b % sub != 0:
        raise ValueError(f"block_b must be a multiple of {sub} for these dtypes, got {block_b}")

    tP = P_pad if P_pad <= block_p else block_p
    tB = B if B <= block_b else block_b

    # ---- fit double-buffered working set into VMEM, set the limit explicitly ----
    cap = _vmem_capacity_bytes()
    budget = int(cap * 0.8)

    def _need(tb, tp):
        # double-buffered x/W/out tiles + resident bias + compiler slack
        return (2 * (tb * K * x_bytes + K * tp * w_bytes + tb * tp * o_bytes)
                + P_pad * 4 + (2 << 20))

    while _need(tB, tP) > budget and tB > sub:
        tB = max(sub, _round_up(tB // 2, sub))
    while _need(tB, tP) > budget and tP > 128:
        tP = max(128, _round_up(tP // 2, 128))
    # TODO(synk): if in_dim grows so large that even (sub, 128) tiles overflow
    # VMEM, add a K grid axis with an f32 VMEM accumulator (pl.when init/store).

    # ---- ensure >= 2 grid steps so a v7x megacore can use both TensorCores ----
    if pl.cdiv(B, tB) * pl.cdiv(P_pad, tP) == 1 and B >= 2 * sub:
        tB = _round_up(pl.cdiv(B, 2), sub)

    nB = pl.cdiv(B, tB)
    nP = pl.cdiv(P_pad, tP)

    # ---- grid ordering: make the larger operand the revisited (resident) one ----
    refetch_p_outer = (nP - 1) * B * K * x_bytes       # x re-read once per extra P tile
    refetch_b_outer = (nB - 1) * K * P_pad * w_bytes   # W re-read once per extra B tile
    p_outer = refetch_p_outer <= refetch_b_outer

    kernel = functools.partial(_mean_net_kernel, tanh_mean=tanh_mean)

    if p_outer:
        # grid = (P tiles, B tiles): W and bias indices constant along the inner
        # (B) axis -> Pallas skips their re-DMA (fetched once per P tile).
        grid = (nP, nB)
        x_spec = pl.BlockSpec((tB, K), lambda p, b: (b, 0))
        w_spec = pl.BlockSpec((K, tP), lambda p, b: (0, p))
        b_spec = pl.BlockSpec((1, tP), lambda p, b: (0, p))
        o_spec = pl.BlockSpec((tB, tP), lambda p, b: (b, p))
    else:
        # grid = (B tiles, P tiles): x index constant along the inner (P) axis.
        grid = (nB, nP)
        x_spec = pl.BlockSpec((tB, K), lambda b, p: (b, 0))
        w_spec = pl.BlockSpec((K, tP), lambda b, p: (0, p))
        b_spec = pl.BlockSpec((1, tP), lambda b, p: (0, p))
        o_spec = pl.BlockSpec((tB, tP), lambda b, p: (b, p))

    vmem_limit = int(min(cap, max(_need(tB, tP) + (4 << 20), 32 << 20)))

    mean_pad = pl.pallas_call(
        kernel,
        out_shape=jax.ShapeDtypeStruct((B, P_pad), out_dtype),
        grid=grid,
        in_specs=[x_spec, w_spec, b_spec],
        out_specs=o_spec,
        compiler_params=pltpu.CompilerParams(
            dimension_semantics=("parallel", "parallel"),
            vmem_limit_bytes=vmem_limit),
    )(x_in, w_in, bias_row)

    mean = mean_pad if P_pad == P else mean_pad[:, :P]

    # TODO(synk): torch.distributions.Normal construction and .sample() are
    # left to the caller; the kernel only produces the (loc, scale) parameters.
    return mean, std


if __name__ == "__main__":
    # ---------- small demo (lane-dense P = 128) ----------
    B, in_dim, ac_dim, ac_chunk = 8, 32, 16, 8
    min_std, tanh_mean, log_std_init = 1e-4, False, 0.0
    P = ac_dim * ac_chunk

    key = jax.random.PRNGKey(0)
    kx, kw, kb = jax.random.split(key, 3)
    x = jax.random.normal(kx, (B, in_dim), dtype=jnp.float32)
    bound = 1.0 / jnp.sqrt(in_dim)
    weight = jax.random.uniform(kw, (in_dim, P), jnp.float32, -bound, bound)
    bias = jax.random.uniform(kb, (P,), jnp.float32, -bound, bound)
    log_std = jnp.full((ac_dim,), log_std_init, dtype=jnp.float32)

    mean, std = gaussian_shared_scale_forward(
        x, weight, bias, log_std, ac_dim=ac_dim, ac_chunk=ac_chunk,
        min_std=min_std, tanh_mean=tanh_mean, zero_std=False)
    jax.block_until_ready((mean, std))

    ref_mean = x @ weight + bias
    ref_std_row = jnp.exp(jnp.tile(log_std, (ac_chunk,))) + min_std
    assert mean.shape == (B, P)
    assert jnp.allclose(mean, ref_mean, atol=1e-5, rtol=1e-5)
    assert jnp.allclose(std[0], ref_std_row, atol=1e-6, rtol=1e-6)

    # zero_std path (compile-time constant row, no kernel cost).
    _, std0 = gaussian_shared_scale_forward(
        x, weight, bias, log_std, ac_dim=ac_dim, ac_chunk=ac_chunk,
        min_std=min_std, tanh_mean=tanh_mean, zero_std=True)
    jax.block_until_ready(std0)
    assert jnp.allclose(std0, jnp.full((1, P), min_std), atol=0, rtol=0)

    # tanh_mean path + torch-parity (B, P) std.
    mean_t, std_full = gaussian_shared_scale_forward(
        x, weight, bias, log_std, ac_dim=ac_dim, ac_chunk=ac_chunk,
        min_std=min_std, tanh_mean=True, zero_std=False, full_std=True)
    jax.block_until_ready((mean_t, std_full))
    assert jnp.allclose(mean_t, jnp.tanh(ref_mean), atol=1e-5, rtol=1e-5)
    assert std_full.shape == (B, P)

    # ---------- P not a multiple of 128: padded-lane path ----------
    acd3, acc3 = 4, 2                                  # P3 = 8 -> padded to 128
    P3 = acd3 * acc3
    k3w, k3b = jax.random.split(jax.random.PRNGKey(2), 2)
    w3 = jax.random.uniform(k3w, (in_dim, P3), jnp.float32, -bound, bound)
    b3 = jax.random.uniform(k3b, (P3,), jnp.float32, -bound, bound)
    ls3 = jnp.full((acd3,), 0.1, dtype=jnp.float32)
    mean3, std3 = gaussian_shared_scale_forward(
        x, w3, b3, ls3, ac_dim=acd3, ac_chunk=acc3,
        min_std=min_std, tanh_mean=False, zero_std=False)
    jax.block_until_ready((mean3, std3))
    assert mean3.shape == (B, P3)
    assert jnp.allclose(mean3, x @ w3 + b3, atol=1e-5, rtol=1e-5)
    assert jnp.allclose(std3[0], jnp.exp(jnp.tile(ls3, (acc3,))) + min_std,
                        atol=1e-6, rtol=1e-6)

    # ---------- moderately sized run: tiled grid, W resident across B tiles ----------
    B2, in2, acd2, acc2 = 512, 64, 64, 4               # P2 = 256
    P2 = acd2 * acc2
    k2x, k2w, k2b = jax.random.split(jax.random.PRNGKey(1), 3)
    x2 = jax.random.normal(k2x, (B2, in2), dtype=jnp.float32)
    bound2 = 1.0 / jnp.sqrt(in2)
    w2 = jax.random.uniform(k2w, (in2, P2), jnp.float32, -bound2, bound2)
    b2 = jax.random.uniform(k2b, (P2,), jnp.float32, -bound2, bound2)
    ls2 = jnp.full((acd2,), -0.5, dtype=jnp.float32)

    mean2, std2 = gaussian_shared_scale_forward(
        x2, w2, b2, ls2, ac_dim=acd2, ac_chunk=acc2,
        min_std=min_std, tanh_mean=False, zero_std=False)
    jax.block_until_ready((mean2, std2))
    ref2 = x2 @ w2 + b2
    assert jnp.allclose(mean2, ref2, atol=1e-4, rtol=1e-4)
    assert jnp.allclose(std2[0], jnp.exp(jnp.tile(ls2, (acc2,))) + min_std,
                        atol=1e-6, rtol=1e-6)

    # bf16 MXU path: producer supplies bf16 x, wrapper only recasts W; bf16 output.
    mean2_bf16, _ = gaussian_shared_scale_forward(
        x2.astype(jnp.bfloat16), w2, b2, ls2, ac_dim=acd2, ac_chunk=acc2,
        min_std=min_std, tanh_mean=False, zero_std=False,
        mxu_dtype=jnp.bfloat16, out_dtype=jnp.bfloat16)
    jax.block_until_ready(mean2_bf16)
    assert mean2_bf16.dtype == jnp.bfloat16
    assert jnp.allclose(mean2_bf16.astype(jnp.float32), ref2, atol=5e-2, rtol=5e-2)

    print("KERNEL_OK")
</pallas_src>

<mosaic_0001>
module attributes {stable_mosaic.version = 11 : i64} {
  func.func @_mean_net_kernel(%arg0: i32, %arg1: i32, %arg2: memref<8x32xf32, #tpu.memory_space<vmem>>, %arg3: memref<32x128xf32, #tpu.memory_space<vmem>>, %arg4: memref<1x128xf32, #tpu.memory_space<vmem>>, %arg5: memref<8x128xf32, #tpu.memory_space<vmem>>) attributes {dimension_semantics = [#tpu.dimension_semantics<parallel>, #tpu.dimension_semantics<parallel>], iteration_bounds = array<i64: 1, 1>, scalar_prefetch = 0 : i64, scratch_operands = 0 : i64, tpu.core_type = #tpu.core_type<tc>, window_params = [{transform_indices = @transform_0, window_bounds = array<i64: 8, 32>}, {transform_indices = @transform_1, window_bounds = array<i64: 32, 128>}, {transform_indices = @transform_2, window_bounds = array<i64: 1, 128>}, {transform_indices = @transform_3, window_bounds = array<i64: 8, 128>}]} {
    %c0 = arith.constant 0 : index
    %c0_0 = arith.constant 0 : index
    %0 = vector.load %arg2[%c0, %c0_0] : memref<8x32xf32, #tpu.memory_space<vmem>>, vector<8x32xf32>
    %c0_1 = arith.constant 0 : index
    %c0_2 = arith.constant 0 : index
    %1 = vector.load %arg3[%c0_1, %c0_2] : memref<32x128xf32, #tpu.memory_space<vmem>>, vector<32x128xf32>
    %cst = arith.constant dense<0.000000e+00> : vector<8x128xf32>
    %2 = tpu.matmul %0, %1, %cst {dimension_numbers = #tpu.dot_dimension_numbers<[1], [0], [0], [1], [0, 0, 1, 1], [], []>} : vector<8x32xf32>, vector<32x128xf32>, vector<8x128xf32> -> vector<8x128xf32>
    %c0_3 = arith.constant 0 : index
    %c0_4 = arith.constant 0 : index
    %3 = vector.load %arg4[%c0_3, %c0_4] : memref<1x128xf32, #tpu.memory_space<vmem>>, vector<1x128xf32>
    %4 = vector.broadcast %3 : vector<1x128xf32> to vector<8x128xf32>
    %5 = arith.addf %2, %4 : vector<8x128xf32>
    %c0_5 = arith.constant 0 : index
    %c0_6 = arith.constant 0 : index
    %6 = vector.load %arg5[%c0_5, %c0_6] : memref<8x128xf32, #tpu.memory_space<vmem>>, vector<8x128xf32>
    tpu.vector_store %arg5[%c0_5, %c0_6], %5 {strides = array<i32>} : memref<8x128xf32, #tpu.memory_space<vmem>>, vector<8x128xf32>,
    return
  }
  func.func @transform_0(%arg0: i32, %arg1: i32) -> (i32, i32) {
    %c0_i32 = arith.constant 0 : i32
    %c0_i32_0 = arith.constant 0 : i32
    return %arg1, %c0_i32 : i32, i32
  }
  func.func @transform_1(%arg0: i32, %arg1: i32) -> (i32, i32) {
    %c0_i32 = arith.constant 0 : i32
    %c0_i32_0 = arith.constant 0 : i32
    return %c0_i32, %arg0 : i32, i32
  }
  func.func @transform_2(%arg0: i32, %arg1: i32) -> (i32, i32) {
    %c0_i32 = arith.constant 0 : i32
    %c0_i32_0 = arith.constant 0 : i32
    return %c0_i32, %arg0 : i32, i32
  }
  func.func @transform_3(%arg0: i32, %arg1: i32) -> (i32, i32) {
    %c0_i32 = arith.constant 0 : i32
    return %arg1, %arg0 : i32, i32
  }
}

</mosaic_0001>

<bundles_post_ra>
// kernel: tpu_custom_call.1
= control target key start
LH: loop header
LB: loop body
LE: loop exit
PB: predicated region body
PF: predicated region fallthrough
CT: control target
= control target key end

     0   :  { %8 = vsyncpa [#allocation3], 0  ;;  %s322_s0 = inlined_call_operand.hbm [shape: f32[8,32], index: 0, kind: input, shape index: {}]   ;;  %s323_s1 = inlined_call_operand.hbm [shape: f32[32,128], index: 1, kind: input, shape index: {}]   ;;  %s324_s2 = inlined_call_operand.vmem [shape: f32[1,128], index: 2, kind: input, shape index: {}]   ;;  %s325_s3 = inlined_call_operand.hbm [shape: f32[8,128], index: 3, kind: output, shape index: {}]  }
   0x1   :  { %9 = vsyncpa [#allocation6], 0 }
   0x2   :  { %10 = vsyncpa [#allocation4], 0  ;;  %s248_s12 = smov [#allocation2]   ;;  %s249_s14 = smov [#allocation5]  }
   0x3   :  { %s17_s13 = sshll.u32 %s248_s12, 4  ;;  %s26_s15 = sshll.u32 %s249_s14, 4  ;;  %s18_s13 = int_to_ptr.vmem [resolvable:$true] %s17_s13  ;;  %s276_s15 = int_to_ptr.vmem [resolvable:$true] %s26_s15 }
   0x4   :  { %s176_s18 = scalar_lea.hbm %s322_s0, 128 }
   0x5   :  { %p177_p0 = scmp.ne.s32.totalorder %s322_s0, %s176_s18  ;;  %p180_p1 = scmp.lt.u32.totalorder %s176_s18, %s322_s0 }
   0x7   :  { %p182_p2 = pnand %p180_p1, %p177_p0 }
   0x9   :  { %185 = shalt.err (!%p182_p2)
}
   0xa   :  { %s186_s23 = scalar_lea.vmem %s18_s13, 128  ;;  %p191_p4 = scmp.lt.s32.totalorder %s18_s13, %s18_s13 }
   0xb   :  { %p187_p3 = scmp.ne.s32.totalorder %s18_s13, %s186_s23  ;;  %p192_p5 = scmp.lt.s32.totalorder %s186_s23, %s186_s23 }
   0xd   :  { %p193_p6 = por %p192_p5, %p191_p4 }
   0xf   :  { %p194_p7 = pnand %p193_p6, %p187_p3 }
  0x11   :  { %197 = shalt.err (!%p194_p7)
}
  0x12   :  { %20 = dma.hbm_to_vmem [thread:$0]  %s322_s0, 128, %s18_s13, [#allocation3]  }
  0x13   :  { %s198_s28 = scalar_lea.hbm %s323_s1, 512 }
  0x14   :  { %p199_p8 = scmp.ne.s32.totalorder %s323_s1, %s198_s28  ;;  %p202_p9 = scmp.lt.u32.totalorder %s198_s28, %s323_s1 }
  0x16   :  { %p204_p10 = pnand %p202_p9, %p199_p8 }
  0x18   :  { %207 = shalt.err (!%p204_p10)
}
  0x19   :  { %s208_s6 = scalar_lea.vmem %s276_s15, 512  ;;  %p213_p12 = scmp.lt.s32.totalorder %s276_s15, %s276_s15 }
  0x1a   :  { %p209_p11 = scmp.ne.s32.totalorder %s276_s15, %s208_s6  ;;  %p214_p13 = scmp.lt.s32.totalorder %s208_s6, %s208_s6 }
  0x1c   :  { %p215_p0 = por %p214_p13, %p213_p12 }
  0x1e   :  { %p216_p1 = pnand %p215_p0, %p209_p11 }
  0x20   :  { %219 = shalt.err (!%p216_p1)
}
  0x21   :  { %s250_s0 = smov 128   ;;  %s251_s7 = smov 8  }
  0x22   :  { %32 = dma.hbm_to_vmem [thread:$0]  %s323_s1, 512, %s276_s15, [#allocation6], %s250_s0, %s250_s0, %s251_s7  }
  0x23   :  { %242 = dma.done.wait [#allocation3], 128  }
  0x24   :  { %243 = vsyncadd [#allocation3], 4294967168 }
  0x25   :  { %244 = dma.done.wait [#allocation6], 512  }
  0x26   :  { %245 = vsyncadd [#allocation6], 4294966784  ;;  %v252_v0 = vmov 0.0|0.0   ;;  %vm253_vm0 = vmmov 0   ;;  %v254_v1 = vmov 0.0   ;;  %v42_v2 = vld [vmem:[#allocation5] sm:$0xff] }
  0x27   :  { %162 = vmatprep.subr.bf16.mxu0 %v252_v0  ;;  %159 = vmatprep.mubr.msk.f32.mxu0 %vm253_vm0, %v254_v1  ;;  %v43_v3 = vld [vmem:[#allocation5 + $0x8] sm:$0xff]  ;;  %v44_v4 = vld [vmem:[#allocation5 + $0x10] sm:$0xff]  ;;  %v45_v6 = vld [vmem:[#allocation5 + $0x18] sm:$0xff]  ;;  %vm53_vm1 = vcmask 261120   ;;  %s255_s11 = smov [#allocation7]  }
  0x28   :  { %v163_v5 = vpack.c.bf16 %v43_v3, %v42_v2  ;;  %v166_v7 = vpack.c.bf16 %v45_v6, %v44_v4  ;;  %v41_v8 = vld [vmem:[#allocation2] sm:$0xff]  ;;  %s134_s12 = sshll.u32 %s255_s11, 4  ;;  %s135_s12 = int_to_ptr.vmem [resolvable:$true] %s134_s12 }
  0x29   :  { %v144_v9 = vld [vmem:[%s324_s2] ss:$0 sm:$0xff]  ;;  %s220_s13 = scalar_lea.vmem %s135_s12, 128  ;;  %p225_p3 = scmp.lt.s32.totalorder %s135_s12, %s135_s12 }
  0x2a   :  { %164 = vmatpush3.bf16.msra.mxu0 %v163_v5  ;;  %p221_p2 = scmp.ne.s32.totalorder %s135_s12, %s220_s13  ;;  %p226_p4 = scmp.lt.s32.totalorder %s220_s13, %s220_s13 }
  0x2b   :  { %165 = vmatprep.subr.bf16.mxu0 %v252_v0 }
  0x2c   :  { %p227_p5 = por %p226_p4, %p225_p3 }
  0x2e   :  { %167 = vmatpush3.bf16.msra.mxu0 %v166_v7  ;;  %p228_p6 = pnand %p227_p5, %p221_p2 }
  0x31   :  { %160 = vmatmul.mubr.msk.f32.vlgmr.msra.gmra.mrb[0].mxu0 %vm53_vm1, %v41_v8 }
 0x104   :  { %v123_v10 = vpop.f32.mrb[0].mxu0 }
 0x105   :  { %v124_v11 = vadd.f32 %v144_v9, %v123_v10  ;;  %v161_v12 = vpop.f32.mrb[1].mxu0 }
 0x107   :  { %127 = vst [vmem:[#allocation7] sm:$0xff] %v124_v11 }
 0x108   :  { %231 = shalt.err (!%p228_p6)
}
 0x109   :  { %s232_s16 = scalar_lea.hbm %s325_s3, 128 }
 0x10a   :  { %p233_p7 = scmp.ne.s32.totalorder %s325_s3, %s232_s16  ;;  %p236_p8 = scmp.lt.u32.totalorder %s232_s16, %s325_s3 }
 0x10c   :  { %p238_p9 = pnand %p236_p8, %p233_p7 }
 0x10e   :  { %241 = shalt.err (!%p238_p9)
}
 0x10f   :  { %137 = dma.vmem_to_hbm [thread:$0]  %s135_s12, 128, %s325_s3, [#allocation4]  }
 0x110   :  { %246 = dma.done.wait [#allocation4], 128  }
 0x111   :  { %247 = vsyncadd [#allocation4], 4294967168 }
 0x112   :  { %141 = vsyncpa [#allocation3], 1 }
 0x113   :  { %142 = vsyncpa [#allocation6], 1 }
 0x114   :  { %143 = vsyncpa [#allocation4], 1 }

</bundles_post_ra>
